<compile_context>
chip_gen: v7x
topology: tpu7x:2x2x1
jax: 0.10.0
libtpu: 0.0.40
codegen_flags: <defaults>
</compile_context>

<pallas_src>
import jax
import jax.numpy as jnp
from jax.experimental import pallas as pl
from jax.experimental.pallas import tpu as pltpu


# ---------------------------------------------------------------------------
# Fused kernel: one grid step == one graph of the batch.
# ---------------------------------------------------------------------------
def _fused_gcn_kernel(a_ref, x_ref, m_ref, p_ref,
                      w1_ref, b1_ref, w2_ref, b2_ref,
                      wch_ref, wcp_ref, bc_ref, out_ref):
    # a_ref  : (n, n)        bf16  normalized adjacency block of this graph
    # x_ref  : (n, F_in)     bf16  node features of this graph
    # m_ref  : (1, n)        f32   mean-readout row (1/|V| on real nodes, 0 on pad)
    # p_ref  : (1, P)        f32   permission features of this graph
    # w1/b1, w2/b2           bf16/f32 GraphConv params (grid-invariant)
    # wch/wcp/bc             f32   classifier params (grid-invariant)
    # out_ref: (1, C)        f32   logits of this graph
    a = a_ref[...]
    x = x_ref[...]

    # ---- conv1: h1 = relu(A @ x @ W1 + b1) --------------------------------
    agg1 = jnp.dot(a, x, preferred_element_type=jnp.float32)               # (n, F_in)
    h1 = jnp.dot(agg1.astype(jnp.bfloat16), w1_ref[...],
                 preferred_element_type=jnp.float32) + b1_ref[...]         # (n, H)
    h1 = jnp.maximum(h1, 0.0).astype(jnp.bfloat16)

    # ---- conv2: h2 = A @ h1 @ W2 + b2 --------------------------------------
    agg2 = jnp.dot(a, h1, preferred_element_type=jnp.float32)              # (n, H)
    h2 = jnp.dot(agg2.astype(jnp.bfloat16), w2_ref[...],
                 preferred_element_type=jnp.float32) + b2_ref[...]         # (n, H)

    # ---- mean_nodes readout (f32, exact; mean row zeroes out any padding) --
    hg = jnp.dot(m_ref[...], h2, preferred_element_type=jnp.float32)       # (1, H)

    # ---- classifier: cat([hg, perm]) @ Wc^T + bc ----------------------------
    logits = (jnp.dot(hg, wch_ref[...], preferred_element_type=jnp.float32)
              + jnp.dot(p_ref[...], wcp_ref[...], preferred_element_type=jnp.float32)
              + bc_ref[...])                                               # (1, C)
    out_ref[...] = logits


def _vmem_limit_bytes(n, f_in, hidden, perm_len, n_classes):
    """Conservative scoped-VMEM budget (double-buffered per-graph blocks + weights)."""
    bf16, f32 = 2, 4
    per_graph = 2 * ((n * n + n * f_in) * bf16 + (n + perm_len + n_classes) * f32)
    weights = (f_in * hidden + hidden * hidden) * bf16 + (
        2 * hidden + (hidden + perm_len + 1) * n_classes) * f32
    temps = 6 * n * max(f_in, hidden) * f32          # agg/h1/h2 in-kernel temporaries
    need = per_graph + weights + temps + (2 << 20)
    return int(min(max(2 * need, 32 << 20), 64 << 20))


def gcn_model_forward(params, a_blocks, h_blocks, mean_rows, perm_features):
    """Full forward pass of GCNModel for a batched graph with uniform block size n."""
    num_graphs, n, f_in = h_blocks.shape
    hidden = params["w1"].shape[1]
    perm_len = perm_features.shape[-1]
    num_classes = params["wc_h"].shape[1]

    # Pre-cast the MXU-heavy streams to bf16 (f32 accumulation happens in-kernel).
    a_bf = a_blocks.astype(jnp.bfloat16)
    x_bf = h_blocks.astype(jnp.bfloat16)
    w1_bf = params["w1"].astype(jnp.bfloat16)
    w2_bf = params["w2"].astype(jnp.bfloat16)
    mean3 = mean_rows.reshape(num_graphs, 1, n).astype(jnp.float32)
    perm3 = perm_features.reshape(num_graphs, 1, perm_len).astype(jnp.float32)

    grid_spec = pltpu.PrefetchScalarGridSpec(
        num_scalar_prefetch=0,
        grid=(num_graphs,),
        in_specs=[
            pl.BlockSpec((None, n, n), lambda g: (g, 0, 0)),            # adjacency block
            pl.BlockSpec((None, n, f_in), lambda g: (g, 0, 0)),         # node features
            pl.BlockSpec((None, 1, n), lambda g: (g, 0, 0)),            # mean-readout row
            pl.BlockSpec((None, 1, perm_len), lambda g: (g, 0, 0)),     # perm features
            pl.BlockSpec((f_in, hidden), lambda g: (0, 0)),             # W1 (resident)
            pl.BlockSpec((1, hidden), lambda g: (0, 0)),                # b1
            pl.BlockSpec((hidden, hidden), lambda g: (0, 0)),           # W2
            pl.BlockSpec((1, hidden), lambda g: (0, 0)),                # b2
            pl.BlockSpec((hidden, num_classes), lambda g: (0, 0)),      # Wc_h
            pl.BlockSpec((perm_len, num_classes), lambda g: (0, 0)),    # Wc_p
            pl.BlockSpec((1, num_classes), lambda g: (0, 0)),           # bc
        ],
        out_specs=pl.BlockSpec((None, 1, num_classes), lambda g: (g, 0, 0)),
    )

    out = pl.pallas_call(
        _fused_gcn_kernel,
        out_shape=jax.ShapeDtypeStruct((num_graphs, 1, num_classes), jnp.float32),
        grid_spec=grid_spec,
        compiler_params=pltpu.CompilerParams(
            dimension_semantics=("parallel",),   # megacore split over graphs on v7x
            vmem_limit_bytes=_vmem_limit_bytes(n, f_in, hidden, perm_len, num_classes)),
    )(a_bf, x_bf, mean3, perm3, w1_bf, params["b1"], w2_bf, params["b2"],
      params["wc_h"], params["wc_p"], params["bc"])
    return out.reshape(num_graphs, num_classes)


# ---------------------------------------------------------------------------
# Host-side graph preprocessing (what dgl does with the batched graph object).
# ---------------------------------------------------------------------------
def build_graph_operators(adj_binary, num_graphs, nodes_per_graph):
    """adj_binary[v,u] = 1 iff edge u -> v, block-diagonal per graph.

    Returns per-graph normalized adjacency blocks (B, n, n) f32 and per-graph
    mean-readout rows (B, 1, n) f32 (1/|V_b| on real nodes, 0 on padding).
    """
    deg_in = jnp.maximum(jnp.sum(adj_binary, axis=1), 1.0)     # in-degree of dst
    deg_out = jnp.maximum(jnp.sum(adj_binary, axis=0), 1.0)    # out-degree of src
    a_norm = adj_binary * (deg_in ** -0.5)[:, None] * (deg_out ** -0.5)[None, :]
    n = nodes_per_graph
    a_blocks = jnp.stack(
        [a_norm[g * n:(g + 1) * n, g * n:(g + 1) * n] for g in range(num_graphs)])
    mean_rows = jnp.full((num_graphs, 1, n), 1.0 / n, dtype=jnp.float32)
    return a_blocks, mean_rows


# Pure-JAX reference (f32) for a correctness sanity check.
def gcn_reference(params, a_blocks, h_blocks, mean_rows, perm_features):
    a = a_blocks.astype(jnp.float32)
    x = h_blocks.astype(jnp.float32)
    h1 = jnp.maximum(jnp.einsum("bij,bjf->bif", a, x) @ params["w1"] + params["b1"], 0.0)
    h2 = jnp.einsum("bij,bjf->bif", a, h1) @ params["w2"] + params["b2"]
    hg = jnp.einsum("bin,bnf->bif", mean_rows, h2)[:, 0, :]
    return hg @ params["wc_h"] + perm_features @ params["wc_p"] + params["bc"]


if __name__ == "__main__":
    # Small, module-consistent shapes.
    num_graphs = 4
    nodes_per_graph = 8
    N = num_graphs * nodes_per_graph          # 32 total nodes in the batched graph
    input_dim = 16
    hidden_dim = 32
    perm_length = 16
    num_classes = 4

    key = jax.random.PRNGKey(0)
    keys = jax.random.split(key, 8)

    def rnd(k, shape, scale=0.1):
        return (scale * jax.random.normal(k, shape)).astype(jnp.float32)

    params = {
        # conv1: GraphConv(input_dim -> hidden_dim)
        "w1": rnd(keys[0], (input_dim, hidden_dim)),
        "b1": rnd(keys[1], (1, hidden_dim)),
        # conv2: GraphConv(hidden_dim -> hidden_dim)
        "w2": rnd(keys[2], (hidden_dim, hidden_dim)),
        "b2": rnd(keys[3], (1, hidden_dim)),
        # classify: Linear(hidden_dim + perm_length -> num_classes), split into the
        # two halves of the concatenation (transposed to (in, out) layout).
        "wc_h": rnd(keys[4], (hidden_dim, num_classes)),
        "wc_p": rnd(keys[5], (perm_length, num_classes)),
        "bc": rnd(keys[6], (1, num_classes)),
    }

    # Node features and per-graph permission features.
    h = rnd(keys[7], (N, input_dim), scale=1.0)
    perm_features = jnp.arange(num_graphs * perm_length, dtype=jnp.float32).reshape(
        num_graphs, perm_length) / (num_graphs * perm_length)

    # Batched graph: each graph fully connected with self-loops (no zero in-degree).
    adj = jnp.zeros((N, N), dtype=jnp.float32)
    for g in range(num_graphs):
        lo = g * nodes_per_graph
        adj = adj.at[lo:lo + nodes_per_graph, lo:lo + nodes_per_graph].set(1.0)

    a_blocks, mean_rows = build_graph_operators(adj, num_graphs, nodes_per_graph)
    h_blocks = h.reshape(num_graphs, nodes_per_graph, input_dim)

    out = gcn_model_forward(params, a_blocks, h_blocks, mean_rows, perm_features)
    jax.block_until_ready(out)
    assert out.shape == (num_graphs, num_classes)

    ref = gcn_reference(params, a_blocks, h_blocks, mean_rows, perm_features)
    assert bool(jnp.isfinite(out).all())
    max_err = float(jnp.max(jnp.abs(out - ref)))
    assert max_err < 5e-2, f"max abs error vs f32 reference: {max_err}"
    print("KERNEL_OK")
</pallas_src>

<mosaic_0001>
module attributes {stable_mosaic.version = 11 : i64} {
  func.func @_fused_gcn_kernel(%arg0: i32, %arg1: memref<1x8x8xbf16, #tpu.memory_space<vmem>>, %arg2: memref<1x8x16xbf16, #tpu.memory_space<vmem>>, %arg3: memref<1x1x8xf32, #tpu.memory_space<vmem>>, %arg4: memref<1x1x16xf32, #tpu.memory_space<vmem>>, %arg5: memref<16x32xbf16, #tpu.memory_space<vmem>>, %arg6: memref<1x32xf32, #tpu.memory_space<vmem>>, %arg7: memref<32x32xbf16, #tpu.memory_space<vmem>>, %arg8: memref<1x32xf32, #tpu.memory_space<vmem>>, %arg9: memref<32x4xf32, #tpu.memory_space<vmem>>, %arg10: memref<16x4xf32, #tpu.memory_space<vmem>>, %arg11: memref<1x4xf32, #tpu.memory_space<vmem>>, %arg12: memref<1x1x4xf32, #tpu.memory_space<vmem>>) attributes {dimension_semantics = [#tpu.dimension_semantics<parallel>], iteration_bounds = array<i64: 4>, scalar_prefetch = 0 : i64, scratch_operands = 0 : i64, tpu.core_type = #tpu.core_type<tc>, window_params = [{transform_indices = @transform_0, window_bounds = array<i64: 1, 8, 8>}, {transform_indices = @transform_1, window_bounds = array<i64: 1, 8, 16>}, {transform_indices = @transform_2, window_bounds = array<i64: 1, 1, 8>}, {transform_indices = @transform_3, window_bounds = array<i64: 1, 1, 16>}, {pipeline_mode = #tpu.pipeline_mode<synchronous>, transform_indices = @transform_4, window_bounds = array<i64: 16, 32>}, {pipeline_mode = #tpu.pipeline_mode<synchronous>, transform_indices = @transform_5, window_bounds = array<i64: 1, 32>}, {pipeline_mode = #tpu.pipeline_mode<synchronous>, transform_indices = @transform_6, window_bounds = array<i64: 32, 32>}, {pipeline_mode = #tpu.pipeline_mode<synchronous>, transform_indices = @transform_7, window_bounds = array<i64: 1, 32>}, {pipeline_mode = #tpu.pipeline_mode<synchronous>, transform_indices = @transform_8, window_bounds = array<i64: 32, 4>}, {pipeline_mode = #tpu.pipeline_mode<synchronous>, transform_indices = @transform_9, window_bounds = array<i64: 16, 4>}, {pipeline_mode = #tpu.pipeline_mode<synchronous>, transform_indices = @transform_10, window_bounds = array<i64: 1, 4>}, {transform_indices = @transform_11, window_bounds = array<i64: 1, 1, 4>}]} {
    %c0 = arith.constant 0 : index
    %c0_0 = arith.constant 0 : index
    %c0_1 = arith.constant 0 : index
    %0 = vector.load %arg1[%c0, %c0_0, %c0_1] : memref<1x8x8xbf16, #tpu.memory_space<vmem>>, vector<1x8x8xbf16>
    %1 = vector.shape_cast %0 : vector<1x8x8xbf16> to vector<8x8xbf16>
    %c0_2 = arith.constant 0 : index
    %c0_3 = arith.constant 0 : index
    %c0_4 = arith.constant 0 : index
    %2 = vector.load %arg2[%c0_2, %c0_3, %c0_4] : memref<1x8x16xbf16, #tpu.memory_space<vmem>>, vector<1x8x16xbf16>
    %3 = vector.shape_cast %2 : vector<1x8x16xbf16> to vector<8x16xbf16>
    %cst = arith.constant dense<0.000000e+00> : vector<8x16xf32>
    %4 = tpu.matmul %1, %3, %cst {dimension_numbers = #tpu.dot_dimension_numbers<[1], [0], [0], [1], [0, 0, 1, 1], [], []>} : vector<8x8xbf16>, vector<8x16xbf16>, vector<8x16xf32> -> vector<8x16xf32>
    %5 = arith.truncf %4 : vector<8x16xf32> to vector<8x16xbf16>
    %c0_5 = arith.constant 0 : index
    %c0_6 = arith.constant 0 : index
    %6 = vector.load %arg5[%c0_5, %c0_6] : memref<16x32xbf16, #tpu.memory_space<vmem>>, vector<16x32xbf16>
    %cst_7 = arith.constant dense<0.000000e+00> : vector<8x32xf32>
    %7 = tpu.matmul %5, %6, %cst_7 {dimension_numbers = #tpu.dot_dimension_numbers<[1], [0], [0], [1], [0, 0, 1, 1], [], []>} : vector<8x16xbf16>, vector<16x32xbf16>, vector<8x32xf32> -> vector<8x32xf32>
    %c0_8 = arith.constant 0 : index
    %c0_9 = arith.constant 0 : index
    %8 = vector.load %arg6[%c0_8, %c0_9] : memref<1x32xf32, #tpu.memory_space<vmem>>, vector<1x32xf32>
    %9 = vector.broadcast %8 : vector<1x32xf32> to vector<8x32xf32>
    %10 = arith.addf %7, %9 : vector<8x32xf32>
    %cst_10 = arith.constant 0.000000e+00 : f32
    %11 = vector.broadcast %cst_10 : f32 to vector<8x32xf32>
    %12 = arith.maximumf %10, %11 : vector<8x32xf32>
    %13 = arith.truncf %12 : vector<8x32xf32> to vector<8x32xbf16>
    %cst_11 = arith.constant dense<0.000000e+00> : vector<8x32xf32>
    %14 = tpu.matmul %1, %13, %cst_11 {dimension_numbers = #tpu.dot_dimension_numbers<[1], [0], [0], [1], [0, 0, 1, 1], [], []>} : vector<8x8xbf16>, vector<8x32xbf16>, vector<8x32xf32> -> vector<8x32xf32>
    %15 = arith.truncf %14 : vector<8x32xf32> to vector<8x32xbf16>
    %c0_12 = arith.constant 0 : index
    %c0_13 = arith.constant 0 : index
    %16 = vector.load %arg7[%c0_12, %c0_13] : memref<32x32xbf16, #tpu.memory_space<vmem>>, vector<32x32xbf16>
    %cst_14 = arith.constant dense<0.000000e+00> : vector<8x32xf32>
    %17 = tpu.matmul %15, %16, %cst_14 {dimension_numbers = #tpu.dot_dimension_numbers<[1], [0], [0], [1], [0, 0, 1, 1], [], []>} : vector<8x32xbf16>, vector<32x32xbf16>, vector<8x32xf32> -> vector<8x32xf32>
    %c0_15 = arith.constant 0 : index
    %c0_16 = arith.constant 0 : index
    %18 = vector.load %arg8[%c0_15, %c0_16] : memref<1x32xf32, #tpu.memory_space<vmem>>, vector<1x32xf32>
    %19 = vector.broadcast %18 : vector<1x32xf32> to vector<8x32xf32>
    %20 = arith.addf %17, %19 : vector<8x32xf32>
    %c0_17 = arith.constant 0 : index
    %c0_18 = arith.constant 0 : index
    %c0_19 = arith.constant 0 : index
    %21 = vector.load %arg3[%c0_17, %c0_18, %c0_19] : memref<1x1x8xf32, #tpu.memory_space<vmem>>, vector<1x1x8xf32>
    %22 = vector.shape_cast %21 : vector<1x1x8xf32> to vector<1x8xf32>
    %cst_20 = arith.constant dense<0.000000e+00> : vector<1x32xf32>
    %23 = tpu.matmul %22, %20, %cst_20 {dimension_numbers = #tpu.dot_dimension_numbers<[1], [0], [0], [1], [0, 0, 1, 1], [], []>} : vector<1x8xf32>, vector<8x32xf32>, vector<1x32xf32> -> vector<1x32xf32>
    %c0_21 = arith.constant 0 : index
    %c0_22 = arith.constant 0 : index
    %24 = vector.load %arg9[%c0_21, %c0_22] : memref<32x4xf32, #tpu.memory_space<vmem>>, vector<32x4xf32>
    %cst_23 = arith.constant dense<0.000000e+00> : vector<1x4xf32>
    %25 = tpu.matmul %23, %24, %cst_23 {dimension_numbers = #tpu.dot_dimension_numbers<[1], [0], [0], [1], [0, 0, 1, 1], [], []>} : vector<1x32xf32>, vector<32x4xf32>, vector<1x4xf32> -> vector<1x4xf32>
    %c0_24 = arith.constant 0 : index
    %c0_25 = arith.constant 0 : index
    %c0_26 = arith.constant 0 : index
    %26 = vector.load %arg4[%c0_24, %c0_25, %c0_26] : memref<1x1x16xf32, #tpu.memory_space<vmem>>, vector<1x1x16xf32>
    %27 = vector.shape_cast %26 : vector<1x1x16xf32> to vector<1x16xf32>
    %c0_27 = arith.constant 0 : index
    %c0_28 = arith.constant 0 : index
    %28 = vector.load %arg10[%c0_27, %c0_28] : memref<16x4xf32, #tpu.memory_space<vmem>>, vector<16x4xf32>
    %cst_29 = arith.constant dense<0.000000e+00> : vector<1x4xf32>
    %29 = tpu.matmul %27, %28, %cst_29 {dimension_numbers = #tpu.dot_dimension_numbers<[1], [0], [0], [1], [0, 0, 1, 1], [], []>} : vector<1x16xf32>, vector<16x4xf32>, vector<1x4xf32> -> vector<1x4xf32>
    %30 = arith.addf %25, %29 : vector<1x4xf32>
    %c0_30 = arith.constant 0 : index
    %c0_31 = arith.constant 0 : index
    %31 = vector.load %arg11[%c0_30, %c0_31] : memref<1x4xf32, #tpu.memory_space<vmem>>, vector<1x4xf32>
    %32 = arith.addf %30, %31 : vector<1x4xf32>
    %c0_32 = arith.constant 0 : index
    %c0_33 = arith.constant 0 : index
    %c0_34 = arith.constant 0 : index
    %33 = vector.load %arg12[%c0_32, %c0_33, %c0_34] : memref<1x1x4xf32, #tpu.memory_space<vmem>>, vector<1x1x4xf32>
    %34 = vector.shape_cast %33 : vector<1x1x4xf32> to vector<1x4xf32>
    %35 = vector.shape_cast %32 : vector<1x4xf32> to vector<1x1x4xf32>
    tpu.vector_store %arg12[%c0_32, %c0_33, %c0_34], %35 {strides = array<i32>} : memref<1x1x4xf32, #tpu.memory_space<vmem>>, vector<1x1x4xf32>,
    return
  }
  func.func @transform_0(%arg0: i32) -> (i32, i32, i32) {
    %c0_i32 = arith.constant 0 : i32
    %c0_i32_0 = arith.constant 0 : i32
    %c0_i32_1 = arith.constant 0 : i32
    return %arg0, %c0_i32, %c0_i32_0 : i32, i32, i32
  }
  func.func @transform_1(%arg0: i32) -> (i32, i32, i32) {
    %c0_i32 = arith.constant 0 : i32
    %c0_i32_0 = arith.constant 0 : i32
    %c0_i32_1 = arith.constant 0 : i32
    return %arg0, %c0_i32, %c0_i32_0 : i32, i32, i32
  }
  func.func @transform_2(%arg0: i32) -> (i32, i32, i32) {
    %c0_i32 = arith.constant 0 : i32
    %c0_i32_0 = arith.constant 0 : i32
    %c0_i32_1 = arith.constant 0 : i32
    return %arg0, %c0_i32, %c0_i32_0 : i32, i32, i32
  }
  func.func @transform_3(%arg0: i32) -> (i32, i32, i32) {
    %c0_i32 = arith.constant 0 : i32
    %c0_i32_0 = arith.constant 0 : i32
    %c0_i32_1 = arith.constant 0 : i32
    return %arg0, %c0_i32, %c0_i32_0 : i32, i32, i32
  }
  func.func @transform_4(%arg0: i32) -> (i32, i32) {
    %c0_i32 = arith.constant 0 : i32
    %c0_i32_0 = arith.constant 0 : i32
    %c0_i32_1 = arith.constant 0 : i32
    return %c0_i32, %c0_i32_0 : i32, i32
  }
  func.func @transform_5(%arg0: i32) -> (i32, i32) {
    %c0_i32 = arith.constant 0 : i32
    %c0_i32_0 = arith.constant 0 : i32
    %c0_i32_1 = arith.constant 0 : i32
    return %c0_i32, %c0_i32_0 : i32, i32
  }
  func.func @transform_6(%arg0: i32) -> (i32, i32) {
    %c0_i32 = arith.constant 0 : i32
    %c0_i32_0 = arith.constant 0 : i32
    %c0_i32_1 = arith.constant 0 : i32
    return %c0_i32, %c0_i32_0 : i32, i32
  }
  func.func @transform_7(%arg0: i32) -> (i32, i32) {
    %c0_i32 = arith.constant 0 : i32
    %c0_i32_0 = arith.constant 0 : i32
    %c0_i32_1 = arith.constant 0 : i32
    return %c0_i32, %c0_i32_0 : i32, i32
  }
  func.func @transform_8(%arg0: i32) -> (i32, i32) {
    %c0_i32 = arith.constant 0 : i32
    %c0_i32_0 = arith.constant 0 : i32
    %c0_i32_1 = arith.constant 0 : i32
    return %c0_i32, %c0_i32_0 : i32, i32
  }
  func.func @transform_9(%arg0: i32) -> (i32, i32) {
    %c0_i32 = arith.constant 0 : i32
    %c0_i32_0 = arith.constant 0 : i32
    %c0_i32_1 = arith.constant 0 : i32
    return %c0_i32, %c0_i32_0 : i32, i32
  }
  func.func @transform_10(%arg0: i32) -> (i32, i32) {
    %c0_i32 = arith.constant 0 : i32
    %c0_i32_0 = arith.constant 0 : i32
    %c0_i32_1 = arith.constant 0 : i32
    return %c0_i32, %c0_i32_0 : i32, i32
  }
  func.func @transform_11(%arg0: i32) -> (i32, i32, i32) {
    %c0_i32 = arith.constant 0 : i32
    %c0_i32_0 = arith.constant 0 : i32
    %c0_i32_1 = arith.constant 0 : i32
    return %arg0, %c0_i32, %c0_i32_0 : i32, i32, i32
  }
}

</mosaic_0001>

<bundles_post_ra>
// kernel: tpu_custom_call.1
= control target key start
LH: loop header
LB: loop body
LE: loop exit
PB: predicated region body
PF: predicated region fallthrough
CT: control target
= control target key end

     0   :  { %s1679_s0 = inlined_call_operand.vmem [shape: bf16[4,8,8], index: 0, kind: input, shape index: {}]   ;;  %s1680_s1 = inlined_call_operand.vmem [shape: bf16[4,8,16], index: 1, kind: input, shape index: {}]   ;;  %s1681_s2 = inlined_call_operand.hbm [shape: f32[4,1,8], index: 2, kind: input, shape index: {}]   ;;  %s1682_s3 = inlined_call_operand.hbm [shape: f32[4,1,16], index: 3, kind: input, shape index: {}]   ;;  %s1683_s4 = inlined_call_operand.vmem [shape: bf16[16,32], index: 4, kind: input, shape index: {}]   ;;  %s1684_s5 = inlined_call_operand.vmem [shape: f32[1,32], index: 5, kind: input, shape index: {}]   ;;  %s1685_s6 = inlined_call_operand.vmem [shape: bf16[32,32], index: 6, kind: input, shape index: {}]   ;;  %s1686_s7 = inlined_call_operand.vmem [shape: f32[1,32], index: 7, kind: input, shape index: {}]   ;;  %s1687_s8 = inlined_call_operand.vmem [shape: f32[32,4], index: 8, kind: input, shape index: {}]   ;;  %s1688_s9 = inlined_call_operand.vmem [shape: f32[16,4], index: 9, kind: input, shape index: {}]   ;;  %s1689_s10 = inlined_call_operand.vmem [shape: f32[1,4], index: 10, kind: input, shape index: {}]   ;;  %s1690_s11 = inlined_call_operand.hbm [shape: f32[4,1,4], index: 11, kind: output, shape index: {}]  }
   0x1   :  { %1697 = sst [smem:[#allocation14_spill]] %s1681_s2 }
   0x2   :  { %16 = vsyncpa [#allocation3], 0 }
   0x3   :  { %18 = vsyncpa [#allocation3 + $0x1], 0 }
   0x4   :  { %19 = vsyncpa [#allocation6], 0 }
   0x5   :  { %21 = vsyncpa [#allocation6 + $0x1], 0 }
   0x6   :  { %22 = vsyncpa [#allocation4], 0 }
   0x7   :  { %24 = vsyncpa [#allocation4 + $0x1], 0  ;;  %s1396_s17 = smov 0   ;;  %s1398_s18 = smov 0  }
   0x8   :  { %s1400_s19 = smov 0   ;;  %s1402_s20 = smov 0  }
   0x9 LB: > { %1698 = sst [smem:[#allocation11_spill]] %s1324_s19  ;;  %s1417_s21 = sadd.s32 4294967295, %s1328_s20   ;;  %s1328_s20 = sphi %s1402_s20, %s1715_s20   ;;  %s1324_s19 = sphi %s1400_s19, %s1717_s19   ;;  %s1320_s18 = sphi %s1398_s18, %s1719_s18   ;;  %s1316_s17 = sphi %s1396_s17, %s1718_s17  }
   0xa   : > { %s1041_s22 = sadd.s32 4294967294, %s1328_s20   ;;  %s1421_s23 = sadd.s32 1, %s1328_s20  }
   0xb   : > { %1699 = sst [smem:[#allocation12_spill]] %s1421_s23  ;;  %s89_s24 = sadd.s32 1, %s1324_s19 }
   0xc   : > { %s86_s25 = ssub.s32 %s1328_s20, %s1421_s23  ;;  %p96_p0 = scmp.ne.s32.totalorder %s1324_s19, %s1320_s18 }
   0xd   : > { %p87_p1 = scmp.eq.s32.totalorder %s86_s25, 0  ;;  %p97_p2 = scmp.eq.s32.totalorder %s1328_s20, 0 }
   0xe   : > { %p102_p3 = scmp.ne.s32.totalorder %s1320_s18, %s1316_s17  ;;  %p103_p4 = scmp.eq.s32.totalorder %s1417_s21, 0 }
   0xf   : > { %s1433_s26 = scalar_select %p87_p1, %s1324_s19, %s89_s24  }
  0x10   : > { %p1435_p5 = por %p97_p2, %p96_p0  ;;  %p1439_p6 = por %p103_p4, %p102_p3 }
  0x11   : > { %1700 = sst [smem:[#allocation13_spill]] %s1433_s26  ;;  %p299_p7 = scmp.eq.s32.totalorder %s1417_s21, 3 }
  0x12   : > { %s1702_s28 = scalar_select %p1439_p6, 1, 0 }
  0x13   : > { %p305_p8 = scmp.eq.s32.totalorder %s1041_s22, 3  ;;  %p1158_p9 = scmp.lt.s32.totalorder %s1328_s20, 4 }
  0x14   : > { %p1445_p10 = por %p299_p7, %p96_p0  ;;  %s1454_s12 = sand.u32 1, %s1324_s19  }
  0x15   : > { %p1449_p11 = por %p305_p8, %p102_p3  ;;  %s1691_s13 = sshll.u32 %s1328_s20, 4 }
  0x16   : > { %s1703_s29 = scalar_select %p1445_p10, 1, 0 }
  0x17   : > { %s1704_s30 = scalar_select %p1449_p11, 1, 0 }
  0x18   : > { %s1705_s2 = sld [smem:[#allocation14_spill]]  ;;  %s363_s22 = scalar_lea.vmem [#allocation2], %s1454_s12 }
  0x19   : > { %s370_s24 = sshll.u32 %s363_s22, 4  ;;  %p1469_p12 = pnand %p1158_p9, %p1435_p5  ;;  %s1465_s24 = int_to_ptr.vmem [resolvable:$true] %s370_s24 }
  0x1a   : > { %s361_s14 = scalar_lea.sflag [#allocation3], %s1454_s12 }
  0x1b   : > { %p1200_p2 = pneg %p1469_p12 }
  0x1e   : > { %s1462_s16 = scalar_lea.hbm %s1705_s2, %s1691_s13  ;;  %s1203_s27 = scalar_lea.hbm %s1705_s2, 64 }
  0x1f   : > { %s1198_s15 = scalar_lea.hbm %s1462_s16, 16  ;;  %p1204_p5 = scmp.lt.u32.totalorder %s1462_s16, %s1705_s2 }
  0x20   : > { %p1199_p1 = scmp.ne.s32.totalorder %s1462_s16, %s1198_s15  ;;  %p1205_p7 = scmp.lt.u32.totalorder %s1203_s27, %s1198_s15 }
  0x21   : > { %p1207_p9 = scmp.lt.u32.totalorder %s1198_s15, %s1462_s16 }
  0x22   : > { %p1201_p3 = pnand %p1200_p2, %p1199_p1  ;;  %p1206_p8 = por %p1205_p7, %p1204_p5 }
  0x24   : > { %p1202_p4 = pneg %p1201_p3  ;;  %p1208_p13 = por %p1207_p9, %p1206_p8 }
  0x26   : > { %p1209_p0 = pnand %p1208_p13, %p1202_p4 }
  0x28   : > { %1212 = shalt.err (!%p1209_p0)
}
  0x29   : > { %s1213_s23 = scalar_lea.vmem %s1465_s24, 16  ;;  %s1330_s13 = smov [#allocation2]  }
  0x2a   : > { %p1214_p1 = scmp.ne.s32.totalorder %s1465_s24, %s1213_s23  ;;  %s1218_s22 = sshll.u32 %s1330_s13, 4  ;;  %s1219_s22 = int_to_ptr.vmem [resolvable:$false] %s1218_s22 }
  0x2b   : > { %s1220_s19 = scalar_lea.vmem %s1219_s22, 32  ;;  %p1221_p10 = scmp.lt.s32.totalorder %s1465_s24, %s1219_s22 }
  0x2c   : > { %p1216_p3 = pnand %p1214_p1, %p1200_p2  ;;  %p1222_p5 = scmp.lt.s32.totalorder %s1220_s19, %s1213_s23 }
  0x2e   : > { %p1217_p11 = pneg %p1216_p3  ;;  %p1223_p7 = por %p1222_p5, %p1221_p10 }
  0x30   : > { %p1224_p8 = pnand %p1223_p7, %p1217_p11 }
  0x32   : > { %1227 = shalt.err (!%p1224_p8)
}
  0x33   : > { %1150 = dma.hbm_to_vmem [thread:$0]  (!%p1469_p12), %s1462_s16, 16, %s1465_s24, %s361_s14  }
  0x34   : > { %p1707_p13 = scmp.lt.s32.totalorder %s1328_s20, 5  ;;  %p1708_p0 = scmp.ge.s32.totalorder %s1328_s20, 1 }
  0x35   : > { %s1710_s23 = sshll.u32 %s1328_s20, 4  ;;  %s380_s22 = scalar_lea.vmem [#allocation5], %s1454_s12 }
  0x36   : > { %p1505_p4 = pnand %p1708_p0, %p1707_p13  ;;  %s1514_s13 = scalar_lea.hbm %s1682_s3, %s1710_s23 }
  0x37   : > { %s387_s19 = sshll.u32 %s380_s22, 4  ;;  %s378_s16 = scalar_lea.sflag [#allocation6], %s1454_s12  ;;  %s388_s19 = int_to_ptr.vmem [resolvable:$true] %s387_s19 }
  0x38   : > { %s1709_s26 = scalar_select %p1505_p4, 1, 0 }
  0x39   : > { %s1228_s24 = scalar_lea.hbm %s1514_s13, 16  ;;  %s1233_s15 = scalar_lea.hbm %s1682_s3, 64 }
  0x3a   : > { %p1229_p10 = scmp.ne.s32.totalorder %s1514_s13, %s1228_s24  ;;  %p1234_p1 = scmp.lt.u32.totalorder %s1514_s13, %s1682_s3 }
  0x3b   : > { %p1235_p3 = scmp.lt.u32.totalorder %s1233_s15, %s1228_s24  ;;  %p1237_p7 = scmp.lt.u32.totalorder %s1228_s24, %s1514_s13 }
  0x3c   : > { %p1231_p11 = pnand %p1229_p10, %p1200_p2 }
  0x3d   : > { %p1236_p5 = por %p1235_p3, %p1234_p1 }
  0x3e   : > { %p1232_p9 = pneg %p1231_p11 }
  0x3f   : > { %p1238_p8 = por %p1237_p7, %p1236_p5 }
  0x41   : > { %p1239_p13 = pnand %p1238_p8, %p1232_p9 }
  0x43   : > { %1242 = shalt.err (!%p1239_p13)
}
  0x44   : > { %s1243_s12 = scalar_lea.vmem %s388_s19, 16  ;;  %s1331_s22 = smov [#allocation5]  }
  0x45   : > { %p1244_p0 = scmp.ne.s32.totalorder %s388_s19, %s1243_s12  ;;  %s1248_s2 = sshll.u32 %s1331_s22, 4  ;;  %s1249_s2 = int_to_ptr.vmem [resolvable:$false] %s1248_s2 }
  0x46   : > { %s1250_s14 = scalar_lea.vmem %s1249_s2, 32  ;;  %p1251_p6 = scmp.lt.s32.totalorder %s388_s19, %s1249_s2 }
  0x47   : > { %p1246_p10 = pnand %p1244_p0, %p1200_p2  ;;  %p1252_p4 = scmp.lt.s32.totalorder %s1250_s14, %s1243_s12 }
  0x49   : > { %p1247_p11 = pneg %p1246_p10  ;;  %p1253_p1 = por %p1252_p4, %p1251_p6 }
  0x4b   : > { %p1254_p3 = pnand %p1253_p1, %p1247_p11 }
  0x4d   : > { %1257 = shalt.err (!%p1254_p3)
}
  0x4e   : > { %1153 = dma.hbm_to_vmem [thread:$0]  (!%p1469_p12), %s1514_s13, 16, %s388_s19, %s378_s16  }
  0x4f   : > { %p1711_p9 = scmp.ne.s32.totalorder %s1709_s26, 0 }
  0x50   : > { %s1540_s24 = sand.u32 (!%p1711_p9), 1, %s1320_s18   ;;  %p1712_p2 = scmp.ne.s32.totalorder (!%p1711_p9), %s1702_s28, 0 }
  0x51   : > { %396 = sbr.rel (%p1711_p9) target bundleno = 1409 (0x581), region = 64  ;;  %s399_s15 = scalar_lea.sflag (!%p1711_p9), [#allocation3], %s1540_s24 }
  0x52   : > { %s401_s23 = scalar_lea.vmem (!%p1711_p9), [#allocation2], %s1540_s24 }
  0x58   : > { %1303 = dma.done.wait (%p1712_p2), %s399_s15, 16  }
  0x59   : > { %1305 = vsyncadd (%p1712_p2), %s399_s15, 4294967280  ;;  %s407_s25 = scalar_lea.sflag [#allocation6], %s1540_s24  ;;  %s409_s13 = scalar_lea.vmem [#allocation5], %s1540_s24 }
  0x5a   : > { %1307 = dma.done.wait (%p1712_p2), %s407_s25, 16  }
  0x5b   : > { %1309 = vsyncadd (%p1712_p2), %s407_s25, 4294967280  ;;  %p458_p6 = scmp.lt.s32.totalorder %s1417_s21, 3  ;;  %v1332_v0 = vmov 0.0   ;;  %vm1333_vm0 = vmmov 0   ;;  %vm473_vm1 = vcmask 1043456   ;;  %vm469_vm2 = vcmask 64512  }
  0x5c   : > { %1083 = vmatprep.subr.bf16.mxu0 %v1332_v0  ;;  %1085 = vmatprep.mubr.msk.bf16.mxu0 %vm1333_vm0, %v1332_v0  ;;  %v1195_v4 = vld [vmem:[%s1683_s4] sm:$0xff]   ;;  %vm533_vm3 = vcmask 130048   ;;  %v1197_v20 = vld [vmem:[%s1685_s6 + $0x8] sm:$0xff]   ;;  %vm646_vm4 = vcmask 261120   ;;  %v1334_v28 = vmov 0.0|0.0   ;;  %v766_v30 = vld [vmem:[%s1687_s8 + $0x10] sm:$0xff] }
  0x5d   : > { %s459_s26 = scalar_select %p458_p6, %s1417_s21, 3  ;;  %1089 = vmatprep.subr.bf16.mxu1 %v1332_v0  ;;  %1091 = vmatprep.mubr.msk.bf16.mxu1 %vm1333_vm0, %v1332_v0  ;;  %v1196_v10 = vld [vmem:[%s1685_s6] sm:$0xff]   ;;  %v765_v27 = vld [vmem:[%s1687_s8 + $0x8] sm:$0xff]  ;;  %v767_v31 = vld [vmem:[%s1687_s8 + $0x18] sm:$0xff]  ;;  %vm919_vm5 = vcmask 24576  }
  0x5e   : > { %1090 = vmatpush3.bf16.msra.mxu1 %v1195_v4  ;;  %v1050_v11 = vld [vmem:[%s1684_s5] ss:$0 sm:$0xff]  ;;  %v1139_v32 = vpack.c.bf16 %v767_v31, %v766_v30  ;;  %v770_v35 = vld [vmem:[%s1688_s9 + $0x8] sm:$0xff]  ;;  %s1061_s15 = sshll.u32 %s1417_s21, 4  ;;  %s457_s25 = scalar_lea.vmem [#allocation7], %s1540_s24 }
  0x5f   : > { %s1047_s19 = sshll.u32 %s459_s26, 2  ;;  %1101 = vmatprep.subr.bf16.mxu1 %v1332_v0  ;;  %v764_v26 = vld [vmem:[%s1687_s8] sm:$0xff]  ;;  %s934_s26 = sshll.u32 %s457_s25, 4  ;;  %s1638_s26 = int_to_ptr.vmem [resolvable:$true] %s934_s26 }
  0x60   : > { %s465_s27 = scalar_lea.vmem %s1680_s1, %s1047_s19  ;;  %s461_s2 = scalar_lea.vmem %s1679_s0, %s1047_s19  ;;  %v1136_v29 = vpack.c.bf16 %v765_v27, %v764_v26  ;;  %v1054_v33 = vld [vmem:[%s1686_s7] ss:$0 sm:$0xff] }
  0x61   : > { %v468_v1 = vld [vmem:[%s465_s27] sm:$0xf]  ;;  %s1636_s16 = scalar_lea.hbm %s1690_s11, %s1061_s15  ;;  %s922_s28 = scalar_lea.sflag [#allocation4], %s1540_s24 }
  0x62   : > { %v467_v2 = vld [vmem:[%s461_s2] sm:$0xf]  ;;  %v475_v3 = vsel %vm473_vm1, %v468_v1, 0  ;;  %s1258_s27 = scalar_lea.vmem %s1638_s26, 16  ;;  %p1713_p4 = scmp.ne.s32.totalorder %s1703_s29, 0 }
  0x63   : > { %1084 = vmatpush3.bf16.msra.mxu0 %v475_v3  ;;  %v769_v34 = vld [vmem:[%s1688_s9] sm:$0xff]  ;;  %p1259_p12 = scmp.ne.s32.totalorder %s1638_s26, %s1258_s27  ;;  %s1335_s21 = smov [#allocation7]  }
  0x64   : > { %1095 = vmatprep.subr.bf16.mxu0 %v1332_v0  ;;  %v690_v39 = vld [vmem:[%s401_s23] sm:$0x1]  ;;  %v1133_v40 = vpack.c.bf16 %v770_v35, %v769_v34  ;;  %s1262_s12 = sshll.u32 %s1335_s21, 4  ;;  %s1263_s12 = int_to_ptr.vmem [resolvable:$false] %s1262_s12 }
  0x65   : > { %v768_v43 = vld [vmem:[%s409_s13] sm:$0x1]  ;;  %p1260_p5 = pnand %p1259_p12, %p1713_p4  ;;  %s1264_s22 = scalar_lea.vmem %s1263_s12, 32 }
  0x66   : > { %1086 = vmatmul.mubr.msk.bf16.vlgmr.msra.gmra.mrb[0].mxu0 %vm469_vm2, %v467_v2  ;;  %v917_v49 = vld [vmem:[%s1689_s10] sm:$0x1]  ;;  %p1265_p8 = scmp.lt.s32.totalorder %s1638_s26, %s1263_s12  ;;  %p1266_p13 = scmp.lt.s32.totalorder %s1264_s22, %s1258_s27 }
  0x67   : > { %1097 = vmatprep.mubr.msk.bf16.mxu0 %vm1333_vm0, %v1332_v0  ;;  %p1261_p7 = pneg %p1260_p5 }
  0x68   : > { %p1267_p0 = por %p1266_p13, %p1265_p8 }
  0x6a   : > { %p1268_p10 = pnand %p1267_p0, %p1261_p7 }
 0x139   : > { %v511_v5 = vpop.f32.mrb[0].mxu0 }
 0x13a   : > { %v517_v6 = vpack.c.bf16 %v511_v5, %v511_v5  ;;  %v1087_v7 = vpop.f32.mrb[1].mxu0 }
 0x13b   : > { %v514_v8 = vpop.f32.mrb[2].mxu0 }
 0x13c   : > { %v1088_v9 = vpop.f32.mrb[3].mxu0  ;;  %1092 = vmatmul.mubr.msk.bf16.vlgmr.msra.gmra.mrb[0].mxu1 %vm533_vm3, %v517_v6 }
 0x13d   : > { %1105 = vmatprep.mubr.msk.bf16.mxu1 %vm1333_vm0, %v1332_v0  ;;  %1102 = vmatpush3.bf16.msra.mxu1 %v1196_v10 }
 0x13e   : > { %1103 = vmatprep.subr.bf16.mxu1 %v1332_v0 }
 0x141   : > { %1104 = vmatpush3.bf16.msra.mxu1 %v1197_v20 }
 0x142   : > { %1109 = vmatprep.subr.mxu1 %v1332_v0 }
 0x20f   : > { %v571_v12 = vpop.f32.mrb[0].mxu1 }
 0x210   : > { %v572_v13 = vadd.f32 %v1050_v11, %v571_v12  ;;  %v1093_v14 = vpop.f32.mrb[1].mxu1 }
 0x211   : > { %v574_v15 = vpop.f32.mrb[2].mxu1 }
 0x212   : > { %v577_v16 = vmax.f32 %v572_v13, 0.0  ;;  %v1094_v17 = vpop.f32.mrb[3].mxu1 }
 0x214   : > { %v578_v18 = vpack.c.bf16 %v577_v16, %v577_v16 }
 0x216   : > { %v580_v19 = vsel %vm473_vm1, %v578_v18, 0 }
 0x217   : > { %1096 = vmatpush3.bf16.msra.mxu0 %v580_v19 }
 0x218   : > { %1135 = vmatprep.subr.bf16.mxu0 %v1334_v28 }
 0x21a   : > { %1098 = vmatmul.mubr.msk.bf16.vlgmr.msra.gmra.mrb[4].mxu0 %vm469_vm2, %v467_v2 }
 0x21b   : > { %1129 = vmatprep.mubr.msk.f32.mxu0 %vm1333_vm0, %v1332_v0  ;;  %1137 = vmatpush3.bf16.msra.mxu0 %v1136_v29 }
 0x21c   : > { %1138 = vmatprep.subr.bf16.mxu0 %v1334_v28 }
 0x21f   : > { %1140 = vmatpush3.bf16.msra.mxu0 %v1139_v32 }
 0x2ed   : > { %v616_v21 = vpop.f32.mrb[4].mxu0 }
 0x2ee   : > { %v622_v22 = vpack.c.bf16 %v616_v21, %v616_v21  ;;  %v1099_v23 = vpop.f32.mrb[5].mxu0 }
 0x2ef   : > { %v619_v24 = vpop.f32.mrb[6].mxu0 }
 0x2f0   : > { %v1100_v25 = vpop.f32.mrb[7].mxu0  ;;  %1106 = vmatmul.mubr.msk.bf16.vlgmr.msra.gmra.mrb[4].mxu1 %vm646_vm4, %v622_v22 }
 0x2f1   : > { %1111 = vmatprep.mubr.msk.f32.mxu1 %vm1333_vm0, %v1332_v0 }
 0x3c3   : > { %v684_v36 = vpop.f32.mrb[4].mxu1 }
 0x3c4   : > { %v685_v37 = vadd.f32 %v1054_v33, %v684_v36  ;;  %v1107_v38 = vpop.f32.mrb[5].mxu1 }
 0x3c5   : > { %v687_v41 = vpop.f32.mrb[6].mxu1 }
 0x3c6   : > { %v1108_v42 = vpop.f32.mrb[7].mxu1  ;;  %1110 = vmatpush3.msra.mxu1 %v685_v37 }
 0x3c7   : > { %1112 = vmatmul.mubr.msk.f32.vlgmr.msra.gmra.mrb[8].mxu1 %vm469_vm2, %v690_v39  ;;  %1132 = vmatprep.subr.bf16.mxu1 %v1334_v28 }
 0x3c8   : > { %1134 = vmatpush3.bf16.msra.mxu1 %v1133_v40  ;;  %1118 = vmatprep.mubr.msk.f32.mxu1 %vm1333_vm0, %v1332_v0 }
 0x3cb   : > { %1119 = vmatmul.mubr.msk.f32.vlgmr.msra.gmra.mrb[10].mxu1 %vm533_vm3, %v768_v43 }
 0x49a   : > { %v760_v44 = vpop.f32.mrb[8].mxu1 }
 0x49b   : > { %v1113_v45 = vpop.f32.mrb[9].mxu1  ;;  %1130 = vmatmul.mubr.msk.f32.vlgmr.msra.gmra.mrb[8].mxu0 %vm646_vm4, %v760_v44 }
 0x49e   : > { %v840_v46 = vpop.f32.mrb[10].mxu1 }
 0x49f   : > { %v1120_v47 = vpop.f32.mrb[11].mxu1 }
 0x56e   : > { %v913_v48 = vpop.f32.mrb[8].mxu0 }
 0x56f   : > { %v914_v50 = vadd.f32 %v913_v48, %v840_v46  ;;  %v1131_v51 = vpop.f32.mrb[9].mxu0 }
 0x571   : > { %v918_v52 = vadd.f32 %v917_v49, %v914_v50 }
 0x573   : > { %920 = vst.msk [vmem:[%s457_s25] sm:$0x1] %vm919_vm5, %v918_v52 }
 0x574   : > { %1271 = shalt.err (!%p1268_p10)
}
 0x575   : > { %s1272_s24 = scalar_lea.hbm %s1636_s16, 16  ;;  %s1276_s14 = scalar_lea.hbm %s1690_s11, 64 }
 0x576   : > { %p1273_p11 = scmp.ne.s32.totalorder %s1636_s16, %s1272_s24  ;;  %p1277_p9 = scmp.lt.u32.totalorder %s1636_s16, %s1690_s11 }
 0x577   : > { %p1278_p2 = scmp.lt.u32.totalorder %s1276_s14, %s1272_s24  ;;  %p1280_p12 = scmp.lt.u32.totalorder %s1272_s24, %s1636_s16 }
 0x578   : > { %p1274_p1 = pnand %p1273_p11, %p1713_p4 }
 0x579   : > { %p1279_p6 = por %p1278_p2, %p1277_p9 }
 0x57a   : > { %p1275_p3 = pneg %p1274_p1 }
 0x57b   : > { %p1281_p5 = por %p1280_p12, %p1279_p6 }
 0x57d   : > { %p1282_p7 = pnand %p1281_p5, %p1275_p3 }
 0x57f   : > { %1285 = shalt.err (!%p1282_p7)
}
 0x580   : > { %1145 = dma.vmem_to_hbm [thread:$0]  (%p1713_p4), %s1638_s26, 16, %s1636_s16, %s922_s28  }
 0x581 PF: > { %p1159_p8 = scmp.ge.s32.totalorder %s1328_s20, 2  ;;  %s946_s13 = sand.u32 1, %s1316_s17  }
 0x582   : > { %p1714_p13 = scmp.ne.s32.totalorder %s1704_s30, 0  ;;  %s947_s19 = scalar_lea.sflag [#allocation4], %s946_s13 }
 0x584   : > { %p1155_p0 = pnand %p1159_p8, %p1714_p13 }
 0x586   : > { %1311 = dma.done.wait (!%p1155_p0), %s947_s19, 16  }
 0x587   : > { %1313 = vsyncadd (!%p1155_p0), %s947_s19, 4294967280  ;;  %s1715_s20 = sld [smem:[#allocation12_spill]]  ;;  %s1716_s27 = sld [smem:[#allocation11_spill]] }
 0x588   : > { %s1717_s19 = sld [smem:[#allocation13_spill]]  ;;  %s1718_s17 = smov %s1320_s18 }
 0x58d   : > { %p27_p10 = scmp.ge.s32.totalorder %s1715_s20, 6   ;;  %s1719_s18 = smov %s1716_s27 }
 0x58f   :  { %29 = sbr.rel (!%p27_p10) target bundleno = 9 (0x9), region = 128 }
 0x596   :  { %951 = vsyncpa [#allocation3], 1 }
 0x597   :  { %953 = vsyncpa [#allocation3 + $0x1], 1 }
 0x598   :  { %954 = vsyncpa [#allocation6], 1 }
 0x599   :  { %956 = vsyncpa [#allocation6 + $0x1], 1 }
 0x59a   :  { %957 = vsyncpa [#allocation4], 1 }
 0x59b   :  { %959 = vsyncpa [#allocation4 + $0x1], 1 }

</bundles_post_ra>
